<compile_context>
chip_gen: v7x
topology: tpu7x:2x2x1
jax: 0.10.0
libtpu: 0.0.40
codegen_flags: <defaults>
</compile_context>

<pallas_src>
import jax
import jax.numpy as jnp
from jax.experimental import pallas as pl
from jax.experimental.pallas import tpu as pltpu

HIDDEN = 30  # matches the PyTorch module


def _round_up(x, m):
    return ((x + m - 1) // m) * m


def _mlp_kernel(x_ref, w1_ref, b1_ref, w2_ref, b2_ref, o_ref):
    # Fused fc1 -> bias -> ReLU -> fc2 -> bias on one VMEM-resident tile.
    x = x_ref[...]                                                   # (TB, D)
    h = jnp.dot(x, w1_ref[...], preferred_element_type=jnp.float32)  # (TB, H)
    h = jnp.maximum(h + b1_ref[...], 0.0)                            # bias + ReLU (f32)
    q = jnp.dot(h, w2_ref[...], preferred_element_type=jnp.float32)  # (TB, A)
    o_ref[...] = (q + b2_ref[...]).astype(o_ref.dtype)


def network_forward(state, params, *, batch_tile=2048):
    """state: (B, input_size) f32 -> q_values: (B, nb_action) f32."""
    w1, b1, w2, b2 = params
    B, D = state.shape
    H = w1.shape[1]
    A = w2.shape[1]

    if B <= batch_tile:
        # Single-block path (online action selection): no grid, no pipeline
        # scaffolding, everything lives in one VMEM block.
        # (For B <= ~8 plain XLA would fuse this with its argmax consumer;
        #  kept on the Pallas path here since the kernel is the point.)
        return pl.pallas_call(
            _mlp_kernel,
            out_shape=jax.ShapeDtypeStruct((B, A), jnp.float32),
        )(state, w1, b1, w2, b2)

    # Batched (replay/training) path: stream batch tiles; weights/biases are
    # VMEM-resident via constant index maps. The batch axis is "parallel" so
    # it shards across TensorCores on v7x / megacore parts.
    # Keep >= 2 grid steps so both v7x TensorCores get work.
    tb = min(batch_tile, _round_up(pl.cdiv(B, 2), 8))
    grid = (pl.cdiv(B, tb),)  # partial last block is masked by Pallas

    return pl.pallas_call(
        _mlp_kernel,
        out_shape=jax.ShapeDtypeStruct((B, A), jnp.float32),
        grid=grid,
        in_specs=[
            pl.BlockSpec((tb, D), lambda i: (i, 0)),
            pl.BlockSpec((D, H), lambda i: (0, 0)),
            pl.BlockSpec((1, H), lambda i: (0, 0)),
            pl.BlockSpec((H, A), lambda i: (0, 0)),
            pl.BlockSpec((1, A), lambda i: (0, 0)),
        ],
        out_specs=pl.BlockSpec((tb, A), lambda i: (i, 0)),
        compiler_params=pltpu.CompilerParams(
            dimension_semantics=("parallel",)),
    )(state, w1, b1, w2, b2)


def init_params(key, input_size, nb_action, hidden_size=HIDDEN):
    """Mimics PyTorch nn.Linear default init U(-1/sqrt(fan_in), 1/sqrt(fan_in)).

    Weights are stored [in, out]. The hidden dim is zero-padded 30 -> 32 once
    here (w1 columns, b1, w2 rows) so in-kernel layouts are aligned; this is
    numerically identical to the 30-wide network. Output stays nb_action wide.
    """
    k1, k2, k3, k4 = jax.random.split(key, 4)
    bound1 = 1.0 / jnp.sqrt(jnp.float32(input_size))
    bound2 = 1.0 / jnp.sqrt(jnp.float32(hidden_size))
    w1 = jax.random.uniform(k1, (input_size, hidden_size), jnp.float32,
                            -bound1, bound1)
    b1 = jax.random.uniform(k2, (hidden_size,), jnp.float32, -bound1, bound1)
    w2 = jax.random.uniform(k3, (hidden_size, nb_action), jnp.float32,
                            -bound2, bound2)
    b2 = jax.random.uniform(k4, (nb_action,), jnp.float32, -bound2, bound2)

    hp = _round_up(hidden_size, 8)  # 30 -> 32
    w1_p = jnp.zeros((input_size, hp), jnp.float32).at[:, :hidden_size].set(w1)
    b1_p = jnp.zeros((1, hp), jnp.float32).at[0, :hidden_size].set(b1)
    w2_p = jnp.zeros((hp, nb_action), jnp.float32).at[:hidden_size, :].set(w2)
    b2_p = b2.reshape(1, nb_action)
    return (w1_p, b1_p, w2_p, b2_p)


def _reference(state, params):
    w1, b1, w2, b2 = params
    h = jnp.maximum(state @ w1 + b1, 0.0)
    return h @ w2 + b2


if __name__ == "__main__":
    # Shapes consistent with the module (self-driving-car DQN: 5 input
    # signals, 3 actions, hidden=30), batch=2 for the inference-style path.
    B, INPUT_SIZE, NB_ACTION = 2, 5, 3

    key = jax.random.PRNGKey(0)
    k_params, k_state, k_big = jax.random.split(key, 3)
    params = init_params(k_params, INPUT_SIZE, NB_ACTION)

    # Small-batch (single-block, no-grid) path.
    state = jax.random.normal(k_state, (B, INPUT_SIZE), jnp.float32)
    q = network_forward(state, params)
    jax.block_until_ready(q)
    assert q.shape == (B, NB_ACTION)
    assert jnp.allclose(q, _reference(state, params), atol=1e-5, rtol=1e-5)

    # Batched (tiled, "parallel" grid) path with a non-multiple-of-tile batch
    # so the masked partial last block is exercised (replay-buffer sized).
    BB = 1000
    state_big = jax.random.normal(k_big, (BB, INPUT_SIZE), jnp.float32)
    q_big = network_forward(state_big, params, batch_tile=256)
    jax.block_until_ready(q_big)
    assert q_big.shape == (BB, NB_ACTION)
    assert jnp.allclose(q_big, _reference(state_big, params),
                        atol=1e-4, rtol=1e-4)

    print("KERNEL_OK")
</pallas_src>

<mosaic_0001>
module attributes {stable_mosaic.version = 11 : i64} {
  func.func @_mlp_kernel(%arg0: memref<2x5xf32, #tpu.memory_space<vmem>>, %arg1: memref<5x32xf32, #tpu.memory_space<vmem>>, %arg2: memref<1x32xf32, #tpu.memory_space<vmem>>, %arg3: memref<32x3xf32, #tpu.memory_space<vmem>>, %arg4: memref<1x3xf32, #tpu.memory_space<vmem>>, %arg5: memref<2x3xf32, #tpu.memory_space<vmem>>) attributes {dimension_semantics = [], scalar_prefetch = 0 : i64, scratch_operands = 0 : i64, tpu.core_type = #tpu.core_type<tc>} {
    %c0 = arith.constant 0 : index
    %c0_0 = arith.constant 0 : index
    %0 = vector.load %arg0[%c0, %c0_0] : memref<2x5xf32, #tpu.memory_space<vmem>>, vector<2x5xf32>
    %c0_1 = arith.constant 0 : index
    %c0_2 = arith.constant 0 : index
    %1 = vector.load %arg1[%c0_1, %c0_2] : memref<5x32xf32, #tpu.memory_space<vmem>>, vector<5x32xf32>
    %cst = arith.constant dense<0.000000e+00> : vector<2x32xf32>
    %2 = tpu.matmul %0, %1, %cst {dimension_numbers = #tpu.dot_dimension_numbers<[1], [0], [0], [1], [0, 0, 1, 1], [], []>} : vector<2x5xf32>, vector<5x32xf32>, vector<2x32xf32> -> vector<2x32xf32>
    %c0_3 = arith.constant 0 : index
    %c0_4 = arith.constant 0 : index
    %3 = vector.load %arg2[%c0_3, %c0_4] : memref<1x32xf32, #tpu.memory_space<vmem>>, vector<1x32xf32>
    %4 = vector.broadcast %3 : vector<1x32xf32> to vector<2x32xf32>
    %5 = arith.addf %2, %4 : vector<2x32xf32>
    %cst_5 = arith.constant 0.000000e+00 : f32
    %6 = vector.broadcast %cst_5 : f32 to vector<2x32xf32>
    %7 = arith.maximumf %5, %6 : vector<2x32xf32>
    %c0_6 = arith.constant 0 : index
    %c0_7 = arith.constant 0 : index
    %8 = vector.load %arg3[%c0_6, %c0_7] : memref<32x3xf32, #tpu.memory_space<vmem>>, vector<32x3xf32>
    %cst_8 = arith.constant dense<0.000000e+00> : vector<2x3xf32>
    %9 = tpu.matmul %7, %8, %cst_8 {dimension_numbers = #tpu.dot_dimension_numbers<[1], [0], [0], [1], [0, 0, 1, 1], [], []>} : vector<2x32xf32>, vector<32x3xf32>, vector<2x3xf32> -> vector<2x3xf32>
    %c0_9 = arith.constant 0 : index
    %c0_10 = arith.constant 0 : index
    %10 = vector.load %arg4[%c0_9, %c0_10] : memref<1x3xf32, #tpu.memory_space<vmem>>, vector<1x3xf32>
    %11 = vector.broadcast %10 : vector<1x3xf32> to vector<2x3xf32>
    %12 = arith.addf %9, %11 : vector<2x3xf32>
    %c0_11 = arith.constant 0 : index
    %c0_12 = arith.constant 0 : index
    %13 = vector.load %arg5[%c0_11, %c0_12] : memref<2x3xf32, #tpu.memory_space<vmem>>, vector<2x3xf32>
    tpu.vector_store %arg5[%c0_11, %c0_12], %12 {strides = array<i32>} : memref<2x3xf32, #tpu.memory_space<vmem>>, vector<2x3xf32>,
    return
  }
}

</mosaic_0001>

<bundles_post_ra>
// kernel: tpu_custom_call.1
= control target key start
LH: loop header
LB: loop body
LE: loop exit
PB: predicated region body
PF: predicated region fallthrough
CT: control target
= control target key end

     0   :  { %vm34_vm0 = vcmask 1044480   ;;  %vm30_vm1 = vcmask 39936   ;;  %v272_v1 = vmov 0.0   ;;  %vm273_vm2 = vmmov 0   ;;  %s342_s0 = inlined_call_operand.vmem [shape: f32[2,5], index: 0, kind: input, shape index: {}]   ;;  %s343_s1 = inlined_call_operand.vmem [shape: f32[5,32], index: 1, kind: input, shape index: {}]   ;;  %s344_s2 = inlined_call_operand.vmem [shape: f32[1,32], index: 2, kind: input, shape index: {}]   ;;  %s345_s3 = inlined_call_operand.vmem [shape: f32[32,3], index: 3, kind: input, shape index: {}]   ;;  %s346_s4 = inlined_call_operand.vmem [shape: f32[1,3], index: 4, kind: input, shape index: {}]   ;;  %s347_s5 = inlined_call_operand.hbm [shape: f32[2,3], index: 5, kind: output, shape index: {}]  }
   0x1   :  { %v22_v0 = vld [vmem:[%s343_s1] sm:$0x1f]  ;;  %222 = vmatprep.subr.mxu0 %v272_v1  ;;  %224 = vmatprep.mubr.msk.f32.mxu0 %vm273_vm2, %v272_v1  ;;  %v110_v4 = vld [vmem:[%s345_s3 + $0x8] sm:$0xff]  ;;  %v274_v5 = vmov 0.0|0.0  }
   0x2   :  { %v21_v2 = vld [vmem:[%s342_s0] sm:$0x3]  ;;  %223 = vmatpush3.msk.msra.mxu0 %vm34_vm0, %v22_v0  ;;  %238 = vmatprep.subr.bf16.mxu1 %v274_v5 }
   0x3   :  { %v109_v3 = vld [vmem:[%s345_s3] sm:$0xff] }
   0x4   :  { %v239_v6 = vpack.c.bf16 %v110_v4, %v109_v3 }
   0x5   :  { %10 = vsyncpa [#allocation3], 0  ;;  %225 = vmatmul.mubr.msk.f32.vlgmr.msra.gmra.mrb[0].mxu0 %vm30_vm1, %v21_v2  ;;  %235 = vmatprep.mubr.msk.f32.mxu1 %vm273_vm2, %v272_v1  ;;  %v111_v7 = vld [vmem:[%s345_s3 + $0x10] sm:$0xff]  ;;  %v112_v8 = vld [vmem:[%s345_s3 + $0x18] sm:$0xff]  ;;  %vm120_vm3 = vcmask 261120   ;;  %s275_s7 = smov [#allocation2]  }
   0x6   :  { %240 = vmatpush3.bf16.msra.mxu1 %v239_v6  ;;  %v242_v9 = vpack.c.bf16 %v112_v8, %v111_v7  ;;  %v210_v10 = vld [vmem:[%s344_s2] ss:$0 sm:$0xff]  ;;  %s202_s8 = sshll.u32 %s275_s7, 4  ;;  %vm194_vm4 = vcmask 17408   ;;  %s203_s8 = int_to_ptr.vmem [resolvable:$true] %s202_s8 }
   0x7   :  { %241 = vmatprep.subr.bf16.mxu1 %v274_v5  ;;  %v213_v15 = vld [vmem:[%s346_s4] ss:$0 sm:$0xff]  ;;  %s248_s3 = scalar_lea.vmem %s203_s8, 32  ;;  %p253_p1 = scmp.lt.s32.totalorder %s203_s8, %s203_s8 }
   0x8   :  { %p249_p0 = scmp.ne.s32.totalorder %s203_s8, %s248_s3  ;;  %p254_p2 = scmp.lt.s32.totalorder %s248_s3, %s248_s3 }
   0xa   :  { %243 = vmatpush3.bf16.msra.mxu1 %v242_v9  ;;  %p255_p3 = por %p254_p2, %p253_p1 }
   0xc   :  { %p256_p4 = pnand %p255_p3, %p249_p0 }
  0xd8   :  { %v104_v11 = vpop.f32.mrb[0].mxu0 }
  0xd9   :  { %v105_v12 = vadd.f32 %v210_v10, %v104_v11  ;;  %v226_v13 = vpop.f32.mrb[1].mxu0 }
  0xdb   :  { %v108_v14 = vmax.f32 %v105_v12, 0.0 }
  0xdd   :  { %236 = vmatmul.mubr.msk.f32.vlgmr.msra.gmra.mrb[0].mxu1 %vm120_vm3, %v108_v14 }
 0x1b0   :  { %v190_v16 = vpop.f32.mrb[0].mxu1 }
 0x1b1   :  { %v191_v17 = vadd.f32 %v213_v15, %v190_v16  ;;  %v237_v18 = vpop.f32.mrb[1].mxu1 }
 0x1b3   :  { %195 = vst.msk [vmem:[#allocation2] sm:$0x3] %vm194_vm4, %v191_v17 }
 0x1b4   :  { %259 = shalt.err (!%p256_p4)
}
 0x1b5   :  { %s260_s10 = scalar_lea.hbm %s347_s5, 32 }
 0x1b6   :  { %p261_p5 = scmp.ne.s32.totalorder %s347_s5, %s260_s10  ;;  %p264_p6 = scmp.lt.u32.totalorder %s260_s10, %s347_s5 }
 0x1b8   :  { %p266_p7 = pnand %p264_p6, %p261_p5 }
 0x1ba   :  { %269 = shalt.err (!%p266_p7)
}
 0x1bb   :  { %205 = dma.vmem_to_hbm [thread:$0]  %s203_s8, 32, %s347_s5, [#allocation3]  }
 0x1bc   :  { %270 = dma.done.wait [#allocation3], 32  }
 0x1bd   :  { %271 = vsyncadd [#allocation3], 4294967264 }
 0x1be   :  { %209 = vsyncpa [#allocation3], 1 }

</bundles_post_ra>
